<compile_context>
chip_gen: v7x
topology: tpu7x:2x2x1
jax: 0.10.0
libtpu: 0.0.40
codegen_flags: <defaults>
</compile_context>

<pallas_src>
import math

import jax
import jax.numpy as jnp
from jax.experimental import pallas as pl
from jax.experimental.pallas import tpu as pltpu


# ----------------------------------------------------------------------------
# Module buffer (matches torch's initialize_positional_encoding exactly).
# ----------------------------------------------------------------------------
def initialize_positional_encoding(d_model: int, max_len: int) -> jnp.ndarray:
    """Builds pe of shape (max_len, 1, d_model), matching the torch buffer."""
    assert d_model % 2 == 0, "d_model must be even (as in the torch module)"
    position = jnp.arange(0, max_len, dtype=jnp.float32)[:, None]            # (L, 1)
    div_term = jnp.exp(
        jnp.arange(0, d_model, 2, dtype=jnp.float32) * (-math.log(10000.0) / d_model)
    )                                                                         # (D/2,)
    angles = position * div_term                                              # (L, D/2)
    pe = jnp.zeros((max_len, d_model), dtype=jnp.float32)
    pe = pe.at[:, 0::2].set(jnp.sin(angles))
    pe = pe.at[:, 1::2].set(jnp.cos(angles))
    # .unsqueeze(0).transpose(0, 1) -> (max_len, 1, d_model)
    return pe[:, None, :]


# ----------------------------------------------------------------------------
# Kernel: elementwise add with in-VMEM broadcast of pe over the batch axis.
# ----------------------------------------------------------------------------
def _add_pe_kernel(x_ref, pe_ref, o_ref):
    # x_ref / o_ref: (tile_s, B, tile_d)      pe_ref: (tile_s, tile_d)
    # The batch broadcast happens in VMEM (VPU/XLU slack is free in this
    # HBM-bandwidth-bound kernel); pe never carries a batch axis in HBM.
    o_ref[...] = (x_ref[...] + pe_ref[...][:, None, :]).astype(o_ref.dtype)


# ----------------------------------------------------------------------------
# Tiling heuristics.
# ----------------------------------------------------------------------------
def _sublane_multiple(dtype) -> int:
    """Dtype-dependent sublane packing: 8 (4B), 16 (2B), 32 (1B)."""
    return {4: 8, 2: 16, 1: 32}.get(jnp.dtype(dtype).itemsize, 8)


def _tpu_generation_params():
    """Best-effort per-generation (target_block_bytes, vmem_limit_bytes)."""
    kind = ""
    try:
        kind = jax.devices()[0].device_kind.lower()
    except Exception:
        pass
    if "v7" in kind:
        # 3.2 TB/s HBM: bigger blocks amortize per-step overhead; stay <64 MiB VMEM.
        return 6 * 1024 * 1024, 48 * 1024 * 1024
    if "v6" in kind:
        return 4 * 1024 * 1024, 40 * 1024 * 1024
    # v5e / unknown: ~2 MiB blocks already hide per-step overhead at ~0.8 TB/s.
    return 2 * 1024 * 1024, 24 * 1024 * 1024


def _choose_tiles(S, B, D, itemsize, sub, target_block_bytes):
    """Pick (tile_s, tile_d) so one x block is ~target_block_bytes."""
    # Lane-axis tile: full D unless even a minimal (sub, B, D) block blows the
    # budget; then split in multiples of 128 (lane-dense, Pallas masks the
    # ragged last block).
    if D <= 128 or sub * B * D * itemsize <= target_block_bytes:
        tile_d = D
    else:
        tile_d = max(128, (target_block_bytes // (sub * B * itemsize)) // 128 * 128)
        tile_d = min(tile_d, D)

    # Sequence-axis tile: fill the block budget, round to the sublane multiple.
    rows = target_block_bytes // max(1, B * tile_d * itemsize)
    rows = max(sub, min(rows, S))
    rows = int(sub * pl.cdiv(rows, sub))
    # Guarantee >=2 sequence grid steps whenever S spans >=2 sublane groups so
    # v7x megacore sharding always has work; no-op for huge S (budget cap wins).
    if pl.cdiv(S, sub) >= 2:
        rows = min(rows, int(sub * pl.cdiv(pl.cdiv(S, 2), sub)))
    return rows, tile_d


# ----------------------------------------------------------------------------
# Forward wrapper.
# ----------------------------------------------------------------------------
def positional_encoding_forward(
    x: jnp.ndarray,
    pe: jnp.ndarray,
    *,
    donate_x: bool = False,
    force_pallas: bool = False,
    min_pallas_elems: int = 64 * 1024,
) -> jnp.ndarray:
    """out = x + pe[:S] for x: (S, B, D); pe: (max_len, 1, D) or (max_len, D)."""
    S, B, D = x.shape
    pe2d = pe[:, 0, :] if pe.ndim == 3 else pe          # (max_len, D) table
    max_len, Dp = pe2d.shape
    assert Dp == D, "pe built for a different d_model"
    assert S <= max_len, "sequence longer than max_len"
    pe2d = pe2d.astype(x.dtype)                          # run the pipe in x's precision

    # Tiny problems: Pallas per-step overhead exceeds the op itself -> plain XLA.
    if (S * B * D) < min_pallas_elems and not force_pallas:
        return x + pe2d[:S][:, None, :]

    target_block_bytes, vmem_limit = _tpu_generation_params()
    itemsize = jnp.dtype(x.dtype).itemsize
    sub = _sublane_multiple(x.dtype)
    tile_s, tile_d = _choose_tiles(S, B, D, itemsize, sub, target_block_bytes)
    grid = (pl.cdiv(S, tile_s), pl.cdiv(D, tile_d))

    return pl.pallas_call(
        _add_pe_kernel,
        out_shape=jax.ShapeDtypeStruct((S, B, D), x.dtype),
        grid=grid,
        in_specs=[
            pl.BlockSpec((tile_s, B, tile_d), lambda i, j: (i, 0, j)),   # x slab
            pl.BlockSpec((tile_s, tile_d), lambda i, j: (i, j)),         # pe (no batch axis)
        ],
        out_specs=pl.BlockSpec((tile_s, B, tile_d), lambda i, j: (i, 0, j)),
        # Footprint-only optimization: only a true in-place update when x's
        # buffer is dead after this call (e.g. jitted + donated); otherwise XLA
        # inserts a defensive copy, so it is OFF by default.
        input_output_aliases={0: 0} if donate_x else {},
        compiler_params=pltpu.CompilerParams(
            dimension_semantics=("parallel", "parallel"),   # megacore-shardable
            vmem_limit_bytes=vmem_limit,
        ),
    )(x, pe2d)


if __name__ == "__main__":
    # Small shapes implied by the module's forward: (seq_len, batch, d_model).
    d_model, max_len, seq_len, batch = 32, 64, 8, 2
    pe = initialize_positional_encoding(d_model, max_len)          # (max_len, 1, D)

    key0, key1 = jax.random.split(jax.random.PRNGKey(0))
    x = jax.random.normal(key0, (seq_len, batch, d_model), dtype=jnp.float32)

    out = positional_encoding_forward(x, pe, force_pallas=True)    # exercise the kernel
    out = jax.block_until_ready(out)
    ref = x + pe[:seq_len]
    assert out.shape == (seq_len, batch, d_model)
    assert jnp.allclose(out, ref, atol=1e-6), "mismatch vs reference (small case)"

    # Slightly larger, lane-dense case: exercises the >=2-step parallel grid
    # and the in-kernel batch broadcast on a 128-wide lane dimension.
    S2, B2, D2 = 64, 4, 128
    pe_big = initialize_positional_encoding(D2, 256)
    x2 = jax.random.normal(key1, (S2, B2, D2), dtype=jnp.float32)
    out2 = jax.block_until_ready(positional_encoding_forward(x2, pe_big, force_pallas=True))
    ref2 = x2 + pe_big[:S2]
    assert jnp.allclose(out2, ref2, atol=1e-6), "mismatch vs reference (large case)"

    print("KERNEL_OK")
</pallas_src>

<mosaic_0001>
module attributes {stable_mosaic.version = 11 : i64} {
  func.func @_add_pe_kernel(%arg0: i32, %arg1: i32, %arg2: memref<8x2x32xf32, #tpu.memory_space<vmem>>, %arg3: memref<8x32xf32, #tpu.memory_space<vmem>>, %arg4: memref<8x2x32xf32, #tpu.memory_space<vmem>>) attributes {dimension_semantics = [#tpu.dimension_semantics<parallel>, #tpu.dimension_semantics<parallel>], iteration_bounds = array<i64: 1, 1>, scalar_prefetch = 0 : i64, scratch_operands = 0 : i64, tpu.core_type = #tpu.core_type<tc>, window_params = [{transform_indices = @transform_0, window_bounds = array<i64: 8, 2, 32>}, {transform_indices = @transform_1, window_bounds = array<i64: 8, 32>}, {transform_indices = @transform_2, window_bounds = array<i64: 8, 2, 32>}]} {
    %c0 = arith.constant 0 : index
    %c0_0 = arith.constant 0 : index
    %c0_1 = arith.constant 0 : index
    %0 = vector.load %arg2[%c0, %c0_0, %c0_1] : memref<8x2x32xf32, #tpu.memory_space<vmem>>, vector<8x2x32xf32>
    %c0_2 = arith.constant 0 : index
    %c0_3 = arith.constant 0 : index
    %1 = vector.load %arg3[%c0_2, %c0_3] : memref<8x32xf32, #tpu.memory_space<vmem>>, vector<8x32xf32>
    %2 = vector.shape_cast %1 : vector<8x32xf32> to vector<8x1x32xf32>
    %3 = vector.broadcast %2 : vector<8x1x32xf32> to vector<8x2x32xf32>
    %4 = arith.addf %0, %3 : vector<8x2x32xf32>
    %c0_4 = arith.constant 0 : index
    %c0_5 = arith.constant 0 : index
    %c0_6 = arith.constant 0 : index
    %5 = vector.load %arg4[%c0_4, %c0_5, %c0_6] : memref<8x2x32xf32, #tpu.memory_space<vmem>>, vector<8x2x32xf32>
    tpu.vector_store %arg4[%c0_4, %c0_5, %c0_6], %4 {strides = array<i32>} : memref<8x2x32xf32, #tpu.memory_space<vmem>>, vector<8x2x32xf32>,
    return
  }
  func.func @transform_0(%arg0: i32, %arg1: i32) -> (i32, i32, i32) {
    %c0_i32 = arith.constant 0 : i32
    %c0_i32_0 = arith.constant 0 : i32
    return %arg0, %c0_i32, %arg1 : i32, i32, i32
  }
  func.func @transform_1(%arg0: i32, %arg1: i32) -> (i32, i32) {
    %c0_i32 = arith.constant 0 : i32
    return %arg0, %arg1 : i32, i32
  }
  func.func @transform_2(%arg0: i32, %arg1: i32) -> (i32, i32, i32) {
    %c0_i32 = arith.constant 0 : i32
    %c0_i32_0 = arith.constant 0 : i32
    return %arg0, %c0_i32, %arg1 : i32, i32, i32
  }
}

</mosaic_0001>

<bundles_post_ra>
// kernel: tpu_custom_call.1
= control target key start
LH: loop header
LB: loop body
LE: loop exit
PB: predicated region body
PF: predicated region fallthrough
CT: control target
= control target key end

     0   :  { %v26_v1 = vlaneseq  ;;  %v172_v2 = vmov 1966171168   ;;  %s238_s0 = inlined_call_operand.vmem [shape: f32[8,2,32], index: 0, kind: input, shape index: {}]   ;;  %s239_s1 = inlined_call_operand.vmem [shape: f32[64,32], index: 1, kind: input, shape index: {}]   ;;  %s240_s2 = inlined_call_operand.hbm [shape: f32[8,2,32], index: 2, kind: output, shape index: {}]  }
   0x1   :  { %v20_v0 = vld [vmem:[%s239_s1] sm:$0xff]  ;;  %v24_v3 = vunpack.c.l.s4 %v172_v2 }
   0x2   :  { %v27_v4 = vshrl.u32 %v26_v1, 7  ;;  %v22_v6 = vcombine.high %v20_v0, %v20_v0 }
   0x3   :  { %v25_v5 = vunpack.c.0.s8 %v24_v3 }
   0x4   :  { %7 = vsyncpa [#allocation3], 0  ;;  %v73_v9 = vsub.s32 0, %v27_v4  ;;  %v12_v15 = vld [vmem:[%s238_s0] sm:$0x3]  ;;  %vm119_vm0 = vcmask 254976  }
   0x5   :  { %v28_v7 = vsub.s32 %v25_v5, %v27_v4  ;;  %v16_v19 = vld [vmem:[%s238_s0 + $0x8] sm:$0x3]  ;;  %v13_v21 = vld [vmem:[%s238_s0 + $0x2] sm:$0x3]  ;;  %v14_v22 = vld [vmem:[%s238_s0 + $0x4] sm:$0x3] }
   0x6   :  { %v17_v29 = vld [vmem:[%s238_s0 + $0xa] sm:$0x3]  ;;  %v18_v30 = vld [vmem:[%s238_s0 + $0xc] sm:$0x3]  ;;  %v15_v31 = vld [vmem:[%s238_s0 + $0x6] sm:$0x3] }
   0x7   :  { %v29_v8 = vrot.slane %v20_v0, %v28_v7  ;;  %v36_v10 = vrot.slane %v22_v6, %v28_v7  ;;  %v19_v39 = vld [vmem:[%s238_s0 + $0xe] sm:$0x3]  ;;  %s173_s26 = smov [#allocation2]  }
   0x8   :  { %s133_s27 = sshll.u32 %s173_s26, 4  ;;  %s134_s27 = int_to_ptr.vmem [resolvable:$true] %s133_s27 }
   0x9   :  { %v45_v11 = vrot.slane %v29_v8, %v28_v7  ;;  %v37_v12 = vcombine.high %v29_v8, %v29_v8  ;;  %v52_v13 = vrot.slane %v36_v10, %v28_v7  ;;  %v38_v14 = vcombine.high %v36_v10, %v36_v10  ;;  %s148_s0 = scalar_lea.vmem %s134_s27, 256  ;;  %p153_p1 = scmp.lt.s32.totalorder %s134_s27, %s134_s27 }
   0xa   :  { %p149_p0 = scmp.ne.s32.totalorder %s134_s27, %s148_s0  ;;  %p154_p2 = scmp.lt.s32.totalorder %s148_s0, %s148_s0 }
   0xb   :  { %v74_v16 = vrot.slane %v45_v11, %v73_v9  ;;  %v59_v17 = vrot.slane %v37_v12, %v28_v7  ;;  %v67_v18 = vcombine.high %v45_v11, %v45_v11  ;;  %v90_v20 = vrot.slane %v52_v13, %v73_v9 }
   0xc   :  { %v66_v23 = vrot.slane %v38_v14, %v28_v7  ;;  %v68_v24 = vcombine.high %v52_v13, %v52_v13  ;;  %p155_p3 = por %p154_p2, %p153_p1 }
   0xd   :  { %v111_v25 = vadd.f32 %v74_v16, %v12_v15  ;;  %v78_v26 = vrot.slane %v59_v17, %v73_v9  ;;  %v82_v27 = vrot.slane %v67_v18, %v73_v9  ;;  %v69_v28 = vcombine.high %v59_v17, %v59_v17 }
   0xe   :  { %v115_v32 = vadd.f32 %v90_v20, %v16_v19  ;;  %v94_v33 = vrot.slane %v66_v23, %v73_v9  ;;  %v98_v34 = vrot.slane %v68_v24, %v73_v9  ;;  %v70_v35 = vcombine.high %v66_v23, %v66_v23  ;;  %p156_p4 = pnand %p155_p3, %p149_p0 }
   0xf   :  { %120 = vst.msk [vmem:[#allocation2] sm:$0x3] %vm119_vm0, %v111_v25  ;;  %v112_v36 = vadd.f32 %v78_v26, %v13_v21  ;;  %v113_v37 = vadd.f32 %v82_v27, %v14_v22  ;;  %v86_v38 = vrot.slane %v69_v28, %v73_v9 }
  0x10   :  { %124 = vst.msk [vmem:[#allocation2 + $0x8] sm:$0x3] %vm119_vm0, %v115_v32  ;;  %v116_v40 = vadd.f32 %v94_v33, %v17_v29  ;;  %v117_v41 = vadd.f32 %v98_v34, %v18_v30  ;;  %v102_v42 = vrot.slane %v70_v35, %v73_v9 }
  0x11   :  { %121 = vst.msk [vmem:[#allocation2 + $0x2] sm:$0x3] %vm119_vm0, %v112_v36  ;;  %122 = vst.msk [vmem:[#allocation2 + $0x4] sm:$0x3] %vm119_vm0, %v113_v37  ;;  %v114_v43 = vadd.f32 %v86_v38, %v15_v31 }
  0x12   :  { %125 = vst.msk [vmem:[#allocation2 + $0xa] sm:$0x3] %vm119_vm0, %v116_v40  ;;  %126 = vst.msk [vmem:[#allocation2 + $0xc] sm:$0x3] %vm119_vm0, %v117_v41  ;;  %v118_v44 = vadd.f32 %v102_v42, %v19_v39 }
  0x13   :  { %123 = vst.msk [vmem:[#allocation2 + $0x6] sm:$0x3] %vm119_vm0, %v114_v43 }
  0x14   :  { %127 = vst.msk [vmem:[#allocation2 + $0xe] sm:$0x3] %vm119_vm0, %v118_v44 }
  0x15   :  { %159 = shalt.err (!%p156_p4)
}
  0x16   :  { %s160_s30 = scalar_lea.hbm %s240_s2, 256 }
  0x17   :  { %p161_p5 = scmp.ne.s32.totalorder %s240_s2, %s160_s30  ;;  %p164_p6 = scmp.lt.u32.totalorder %s160_s30, %s240_s2 }
  0x19   :  { %p166_p7 = pnand %p164_p6, %p161_p5 }
  0x1b   :  { %169 = shalt.err (!%p166_p7)
}
  0x1c   :  { %s174_s7 = smov 32   ;;  %s175_s8 = smov 2  }
  0x1d   :  { %139 = dma.vmem_to_hbm [thread:$0]  %s134_s27, 256, %s240_s2, [#allocation3], %s174_s7, %s174_s7, %s175_s8  }
  0x1e   :  { %170 = dma.done.wait [#allocation3], 256  }
  0x1f   :  { %171 = vsyncadd [#allocation3], 4294967040 }
  0x20   :  { %143 = vsyncpa [#allocation3], 1 }

</bundles_post_ra>
